<compile_context>
chip_gen: v5e
topology: v5e:2x2
jax: 0.10.0
libtpu: 0.0.40
codegen_flags: <defaults>
</compile_context>

<pallas_src>
import functools
import math

import jax
import jax.numpy as jnp
from jax.experimental import pallas as pl
from jax.experimental.pallas import tpu as pltpu


def _round_up(x, m):
    return ((x + m - 1) // m) * m


def _cdiv(a, b):
    return (a + b - 1) // b


@functools.lru_cache(maxsize=None)
def _vmem_limit_bytes():
    """Scoped-VMEM limit sized from the actual chip.

    v5e/v6e have 128 MiB physical VMEM (-> 96 MiB limit), v7x only 64 MiB per
    TensorCore (-> 48 MiB). Falls back to 48 MiB, which is safe everywhere and
    far above this kernel's actual footprint.
    """
    try:
        cap = pltpu.get_tpu_info().vmem_capacity_bytes
        return int(min(cap * 3 // 4, 96 * 1024 * 1024))
    except Exception:
        return 48 * 1024 * 1024


@functools.lru_cache(maxsize=None)
def _default_act_dtype():
    """bf16 elementwise (bias+ReLU) on bf16-native VPUs (v6e/v7x); f32 on v5e."""
    try:
        kind = jax.devices()[0].device_kind.lower()
        if "v5" in kind or "v4" in kind:
            return jnp.float32
    except Exception:
        pass
    return jnp.bfloat16


def _const_block_spec(shape, index_map):
    """BlockSpec for a grid-invariant (weight/bias) block.

    Constant index_map -> the block never changes across the grid, so request
    a single VMEM buffer instead of the default double buffer. Falls back to a
    plain BlockSpec if pipeline_mode / Buffered is unavailable.
    """
    try:
        return pl.BlockSpec(shape, index_map, pipeline_mode=pl.Buffered(1))
    except Exception:
        return pl.BlockSpec(shape, index_map)


def _fused_mlp_kernel(*refs, num_hidden, sigmoid_output, act_dtype):
    """One token tile: out = proj_out(relu(...relu(proj_in(x))...)) [+sigmoid]."""
    x_ref, w_in_ref, b_in_ref = refs[0], refs[1], refs[2]
    if num_hidden > 0:
        w_h_ref, b_h_ref = refs[3], refs[4]
        w_out_ref, b_out_ref, o_ref = refs[5], refs[6], refs[7]
    else:
        w_h_ref = b_h_ref = None
        w_out_ref, b_out_ref, o_ref = refs[3], refs[4], refs[5]

    # proj_in: bf16 MXU operands, f32 accumulate; bias + ReLU in act_dtype.
    h = jnp.dot(x_ref[...], w_in_ref[...], preferred_element_type=jnp.float32)
    h = jnp.maximum(h.astype(act_dtype) + b_in_ref[...], 0).astype(jnp.bfloat16)

    # Hidden layers: weight stack resident in VMEM, statically unrolled.
    for l in range(num_hidden):
        h = jnp.dot(h, w_h_ref[l], preferred_element_type=jnp.float32)
        h = jnp.maximum(h.astype(act_dtype) + b_h_ref[l], 0).astype(jnp.bfloat16)

    # proj_out (+ optional sigmoid): keep f32 for the small output block.
    y = jnp.dot(h, w_out_ref[...], preferred_element_type=jnp.float32)
    y = y + b_out_ref[...]
    if sigmoid_output:
        y = jax.nn.sigmoid(y)
    o_ref[...] = y.astype(o_ref.dtype)


def fused_mlp_forward(x_pad, w_in, b_in, w_h, b_h, w_out, b_out, *,
                      tile_m, sigmoid_output, act_dtype, out_dtype):
    """x_pad: (Mp, Kp) bf16 (feature- and token-padded). Returns (Mp, Np) out_dtype."""
    Mp, Kp = x_pad.shape
    Hp = w_in.shape[1]
    Np = w_out.shape[1]
    num_hidden = 0 if w_h is None else w_h.shape[0]

    in_specs = [
        pl.BlockSpec((tile_m, Kp), lambda i: (i, 0)),               # streamed x tile
        _const_block_spec((Kp, Hp), lambda i: (0, 0)),              # proj_in W (resident)
        _const_block_spec((1, Hp), lambda i: (0, 0)),               # proj_in b
    ]
    args = [x_pad, w_in, b_in]
    if num_hidden > 0:
        in_specs += [
            _const_block_spec((num_hidden, Hp, Hp), lambda i: (0, 0, 0)),  # hidden W stack
            _const_block_spec((num_hidden, 1, Hp), lambda i: (0, 0, 0)),   # hidden b stack
        ]
        args += [w_h, b_h]
    in_specs += [
        _const_block_spec((Hp, Np), lambda i: (0, 0)),              # proj_out W
        _const_block_spec((1, Np), lambda i: (0, 0)),               # proj_out b
    ]
    args += [w_out, b_out]

    flops = 2 * Mp * (Kp * Hp + num_hidden * Hp * Hp + Hp * Np)
    transcendentals = Mp * Np if sigmoid_output else 0
    bytes_accessed = int(
        sum(a.size * a.dtype.itemsize for a in args)
        + Mp * Np * jnp.dtype(out_dtype).itemsize)

    kernel = functools.partial(_fused_mlp_kernel, num_hidden=num_hidden,
                               sigmoid_output=sigmoid_output, act_dtype=act_dtype)

    return pl.pallas_call(
        kernel,
        out_shape=jax.ShapeDtypeStruct((Mp, Np), out_dtype),
        grid_spec=pltpu.PrefetchScalarGridSpec(
            num_scalar_prefetch=0,
            grid=(Mp // tile_m,),
            in_specs=in_specs,
            out_specs=pl.BlockSpec((tile_m, Np), lambda i: (i, 0)),
        ),
        compiler_params=pltpu.CompilerParams(
            dimension_semantics=("parallel",),      # megacore / v7x 2-TC shard
            vmem_limit_bytes=_vmem_limit_bytes(),
        ),
        cost_estimate=pl.CostEstimate(
            flops=flops,
            transcendentals=transcendentals,
            bytes_accessed=bytes_accessed,
        ),
    )(*args)


class SamFeedForwardPallas:
    """JAX/Pallas port of transformers SamFeedForward (fused single-kernel)."""

    def __init__(self, input_dim, hidden_dim, output_dim, num_layers,
                 sigmoid_output=False, key=None, max_tile_m=1024):
        assert num_layers >= 2
        self.input_dim = input_dim
        self.hidden_dim = hidden_dim
        self.output_dim = output_dim
        self.num_layers = num_layers
        self.sigmoid_output = sigmoid_output
        self.max_tile_m = max_tile_m
        self.act_dtype = _default_act_dtype()

        if key is None:
            key = jax.random.PRNGKey(0)

        def init_linear(k, fan_in, fan_out):
            # Deterministic init mimicking nn.Linear's uniform(-1/sqrt(fan_in), .)
            kw, kb = jax.random.split(k)
            bound = 1.0 / math.sqrt(fan_in)
            # Stored already transposed: (in, out) so the kernel does x @ w.
            w = jax.random.uniform(kw, (fan_in, fan_out), jnp.float32,
                                   -bound, bound)
            b = jax.random.uniform(kb, (fan_out,), jnp.float32, -bound, bound)
            return w, b

        keys = jax.random.split(key, num_layers)
        self.proj_in = init_linear(keys[0], input_dim, hidden_dim)
        self.layers = [init_linear(keys[1 + i], hidden_dim, hidden_dim)
                       for i in range(num_layers - 2)]
        self.proj_out = init_linear(keys[num_layers - 1], hidden_dim, output_dim)

        # --- Padded / packed parameters for the fused kernel (lane-dense). ---
        self.Kp = _round_up(input_dim, 128)
        self.Hp = _round_up(hidden_dim, 128)
        self.Np = _round_up(output_dim, 128)

        def pad_w(w, rows, cols):
            return jnp.pad(w, ((0, rows - w.shape[0]), (0, cols - w.shape[1])))

        def pad_b(b, cols):
            return jnp.pad(b, (0, cols - b.shape[0])).reshape(1, cols)

        w_in, b_in = self.proj_in
        self._w_in_p = pad_w(w_in, self.Kp, self.Hp).astype(jnp.bfloat16)
        self._b_in_p = pad_b(b_in, self.Hp).astype(self.act_dtype)

        if self.layers:
            self._w_h_p = jnp.stack(
                [pad_w(w, self.Hp, self.Hp) for (w, _) in self.layers]
            ).astype(jnp.bfloat16)                                   # (L-2, Hp, Hp)
            self._b_h_p = jnp.stack(
                [pad_b(b, self.Hp) for (_, b) in self.layers]
            ).astype(self.act_dtype)                                 # (L-2, 1, Hp)
        else:
            self._w_h_p = None
            self._b_h_p = None

        w_out, b_out = self.proj_out
        self._w_out_p = pad_w(w_out, self.Hp, self.Np).astype(jnp.bfloat16)
        self._b_out_p = pad_b(b_out, self.Np)                        # f32 (1, Np)

    def __call__(self, hidden_states):
        # hidden_states: (..., input_dim); flatten leading dims to tokens.
        lead = hidden_states.shape[:-1]
        in_dtype = hidden_states.dtype
        x = hidden_states.reshape(-1, self.input_dim)
        M = x.shape[0]

        # Balanced token tiles, multiple of 16 (bf16 (16,128) tiling). Force at
        # least 2 tiles for medium/large M so the "parallel" axis has work to
        # shard across v7x's two TensorCores.
        num_tiles = max(1, _cdiv(M, self.max_tile_m))
        if M > 256:
            num_tiles = max(num_tiles, 2)
        tile_m = max(16, _round_up(_cdiv(M, num_tiles), 16))
        Mp = tile_m * num_tiles

        # Stream x in bf16 (halves HBM traffic of the dominant streamed input);
        # skip the pad pass entirely when no padding is needed.
        x_bf16 = x.astype(jnp.bfloat16)
        if Mp != M or self.Kp != self.input_dim:
            x_bf16 = jnp.pad(x_bf16,
                             ((0, Mp - M), (0, self.Kp - self.input_dim)))

        out_p = fused_mlp_forward(
            x_bf16, self._w_in_p, self._b_in_p, self._w_h_p, self._b_h_p,
            self._w_out_p, self._b_out_p,
            tile_m=tile_m, sigmoid_output=self.sigmoid_output,
            act_dtype=self.act_dtype, out_dtype=jnp.bfloat16)

        out = out_p
        if Mp != M or self.Np != self.output_dim:
            out = out[:M, :self.output_dim]
        return out.astype(in_dtype).reshape(*lead, self.output_dim)


def _reference_forward(model, hidden_states):
    """Pure-JAX f32 reference matching the PyTorch forward."""
    x = hidden_states.astype(jnp.float32)
    w, b = model.proj_in
    x = jax.nn.relu(x @ w + b)
    for (w, b) in model.layers:
        x = jax.nn.relu(x @ w + b)
    w, b = model.proj_out
    x = x @ w + b
    if model.sigmoid_output:
        x = jax.nn.sigmoid(x)
    return x


if __name__ == "__main__":
    key = jax.random.PRNGKey(0)
    k_in, k_in2, k_p1, k_p2 = jax.random.split(key, 4)

    batch, seq = 2, 8
    input_dim, hidden_dim, output_dim, num_layers = 32, 64, 16, 3

    x = jax.random.normal(k_in, (batch, seq, input_dim), jnp.float32)

    # 3-layer head with sigmoid output (typical SAM IoU head config).
    model = SamFeedForwardPallas(input_dim, hidden_dim, output_dim, num_layers,
                                 sigmoid_output=True, key=k_p1)
    out = jax.block_until_ready(model(x))
    ref = _reference_forward(model, x)
    assert out.shape == (batch, seq, output_dim)
    # bf16 matmul operands / bf16 streamed IO (f32 accumulate) -> loose tol.
    assert jnp.allclose(out, ref, atol=3e-2, rtol=3e-2), "mismatch (sigmoid head)"

    # 2-layer head (no hidden layers, no sigmoid) exercises the other code path.
    model2 = SamFeedForwardPallas(input_dim, hidden_dim, output_dim,
                                  num_layers=2, sigmoid_output=False, key=k_p2)
    out2 = jax.block_until_ready(model2(x))
    ref2 = _reference_forward(model2, x)
    assert out2.shape == (batch, seq, output_dim)
    assert jnp.allclose(out2, ref2, atol=3e-2, rtol=3e-2), "mismatch (2-layer head)"

    # Larger, non-aligned token count: exercises balanced multi-tile grid
    # (num_tiles >= 2) and token padding / slicing path.
    x3 = jax.random.normal(k_in2, (3, 97, input_dim), jnp.float32)
    out3 = jax.block_until_ready(model(x3))
    ref3 = _reference_forward(model, x3)
    assert out3.shape == (3, 97, output_dim)
    assert jnp.allclose(out3, ref3, atol=3e-2, rtol=3e-2), "mismatch (multi-tile)"

    print("KERNEL_OK")
</pallas_src>

<mosaic_0001>
module attributes {stable_mosaic.version = 11 : i64} {
  func.func @_fused_mlp_kernel(%arg0: i32, %arg1: memref<16x128xbf16, #tpu.memory_space<vmem>>, %arg2: memref<128x128xbf16, #tpu.memory_space<vmem>>, %arg3: memref<1x128xbf16, #tpu.memory_space<vmem>>, %arg4: memref<1x128x128xbf16, #tpu.memory_space<vmem>>, %arg5: memref<1x1x128xbf16, #tpu.memory_space<vmem>>, %arg6: memref<128x128xbf16, #tpu.memory_space<vmem>>, %arg7: memref<1x128xf32, #tpu.memory_space<vmem>>, %arg8: memref<16x128xbf16, #tpu.memory_space<vmem>>) attributes {dimension_semantics = [#tpu.dimension_semantics<parallel>], iteration_bounds = array<i64: 1>, scalar_prefetch = 0 : i64, scratch_operands = 0 : i64, tpu.core_type = #tpu.core_type<tc>, window_params = [{transform_indices = @transform_0, window_bounds = array<i64: 16, 128>}, {pipeline_mode = #tpu.pipeline_mode<synchronous>, transform_indices = @transform_1, window_bounds = array<i64: 128, 128>}, {pipeline_mode = #tpu.pipeline_mode<synchronous>, transform_indices = @transform_2, window_bounds = array<i64: 1, 128>}, {pipeline_mode = #tpu.pipeline_mode<synchronous>, transform_indices = @transform_3, window_bounds = array<i64: 1, 128, 128>}, {pipeline_mode = #tpu.pipeline_mode<synchronous>, transform_indices = @transform_4, window_bounds = array<i64: 1, 1, 128>}, {pipeline_mode = #tpu.pipeline_mode<synchronous>, transform_indices = @transform_5, window_bounds = array<i64: 128, 128>}, {pipeline_mode = #tpu.pipeline_mode<synchronous>, transform_indices = @transform_6, window_bounds = array<i64: 1, 128>}, {transform_indices = @transform_7, window_bounds = array<i64: 16, 128>}]} {
    %c0 = arith.constant 0 : index
    %c0_0 = arith.constant 0 : index
    %0 = vector.load %arg1[%c0, %c0_0] : memref<16x128xbf16, #tpu.memory_space<vmem>>, vector<16x128xbf16>
    %c0_1 = arith.constant 0 : index
    %c0_2 = arith.constant 0 : index
    %1 = vector.load %arg2[%c0_1, %c0_2] : memref<128x128xbf16, #tpu.memory_space<vmem>>, vector<128x128xbf16>
    %cst = arith.constant dense<0.000000e+00> : vector<16x128xf32>
    %2 = tpu.matmul %0, %1, %cst {dimension_numbers = #tpu.dot_dimension_numbers<[1], [0], [0], [1], [0, 0, 1, 1], [], []>} : vector<16x128xbf16>, vector<128x128xbf16>, vector<16x128xf32> -> vector<16x128xf32>
    %3 = arith.truncf %2 : vector<16x128xf32> to vector<16x128xbf16>
    %c0_3 = arith.constant 0 : index
    %c0_4 = arith.constant 0 : index
    %4 = vector.load %arg3[%c0_3, %c0_4] : memref<1x128xbf16, #tpu.memory_space<vmem>>, vector<1x128xbf16>
    %5 = vector.broadcast %4 : vector<1x128xbf16> to vector<16x128xbf16>
    %6 = arith.addf %3, %5 : vector<16x128xbf16>
    %cst_5 = arith.constant 0.000000e+00 : bf16
    %7 = vector.broadcast %cst_5 : bf16 to vector<16x128xbf16>
    %8 = arith.maximumf %6, %7 : vector<16x128xbf16>
    %c0_6 = arith.constant 0 : index
    %c0_7 = arith.constant 0 : index
    %c0_8 = arith.constant 0 : index
    %9 = vector.load %arg4[%c0_6, %c0_7, %c0_8] : memref<1x128x128xbf16, #tpu.memory_space<vmem>>, vector<1x128x128xbf16>
    %10 = vector.shape_cast %9 : vector<1x128x128xbf16> to vector<128x128xbf16>
    %cst_9 = arith.constant dense<0.000000e+00> : vector<16x128xf32>
    %11 = tpu.matmul %8, %10, %cst_9 {dimension_numbers = #tpu.dot_dimension_numbers<[1], [0], [0], [1], [0, 0, 1, 1], [], []>} : vector<16x128xbf16>, vector<128x128xbf16>, vector<16x128xf32> -> vector<16x128xf32>
    %12 = arith.truncf %11 : vector<16x128xf32> to vector<16x128xbf16>
    %c0_10 = arith.constant 0 : index
    %c0_11 = arith.constant 0 : index
    %c0_12 = arith.constant 0 : index
    %13 = vector.load %arg5[%c0_10, %c0_11, %c0_12] : memref<1x1x128xbf16, #tpu.memory_space<vmem>>, vector<1x1x128xbf16>
    %14 = vector.shape_cast %13 : vector<1x1x128xbf16> to vector<1x128xbf16>
    %15 = vector.broadcast %14 : vector<1x128xbf16> to vector<16x128xbf16>
    %16 = arith.addf %12, %15 : vector<16x128xbf16>
    %cst_13 = arith.constant 0.000000e+00 : bf16
    %17 = vector.broadcast %cst_13 : bf16 to vector<16x128xbf16>
    %18 = arith.maximumf %16, %17 : vector<16x128xbf16>
    %c0_14 = arith.constant 0 : index
    %c0_15 = arith.constant 0 : index
    %19 = vector.load %arg6[%c0_14, %c0_15] : memref<128x128xbf16, #tpu.memory_space<vmem>>, vector<128x128xbf16>
    %cst_16 = arith.constant dense<0.000000e+00> : vector<16x128xf32>
    %20 = tpu.matmul %18, %19, %cst_16 {dimension_numbers = #tpu.dot_dimension_numbers<[1], [0], [0], [1], [0, 0, 1, 1], [], []>} : vector<16x128xbf16>, vector<128x128xbf16>, vector<16x128xf32> -> vector<16x128xf32>
    %c0_17 = arith.constant 0 : index
    %c0_18 = arith.constant 0 : index
    %21 = vector.load %arg7[%c0_17, %c0_18] : memref<1x128xf32, #tpu.memory_space<vmem>>, vector<1x128xf32>
    %22 = vector.broadcast %21 : vector<1x128xf32> to vector<16x128xf32>
    %23 = arith.addf %20, %22 : vector<16x128xf32>
    %24 = arith.negf %23 : vector<16x128xf32>
    %25 = math.exp %24 : vector<16x128xf32>
    %cst_19 = arith.constant 1.000000e+00 : f32
    %26 = vector.broadcast %cst_19 : f32 to vector<16x128xf32>
    %27 = arith.addf %26, %25 : vector<16x128xf32>
    %28 = arith.divf %26, %27 : vector<16x128xf32>
    %29 = arith.truncf %28 : vector<16x128xf32> to vector<16x128xbf16>
    %c0_20 = arith.constant 0 : index
    %c0_21 = arith.constant 0 : index
    %30 = vector.load %arg8[%c0_20, %c0_21] : memref<16x128xbf16, #tpu.memory_space<vmem>>, vector<16x128xbf16>
    tpu.vector_store %arg8[%c0_20, %c0_21], %29 {strides = array<i32>} : memref<16x128xbf16, #tpu.memory_space<vmem>>, vector<16x128xbf16>,
    return
  }
  func.func @transform_0(%arg0: i32) -> (i32, i32) {
    %c0_i32 = arith.constant 0 : i32
    %c0_i32_0 = arith.constant 0 : i32
    return %arg0, %c0_i32 : i32, i32
  }
  func.func @transform_1(%arg0: i32) -> (i32, i32) {
    %c0_i32 = arith.constant 0 : i32
    %c0_i32_0 = arith.constant 0 : i32
    %c0_i32_1 = arith.constant 0 : i32
    return %c0_i32, %c0_i32_0 : i32, i32
  }
  func.func @transform_2(%arg0: i32) -> (i32, i32) {
    %c0_i32 = arith.constant 0 : i32
    %c0_i32_0 = arith.constant 0 : i32
    %c0_i32_1 = arith.constant 0 : i32
    return %c0_i32, %c0_i32_0 : i32, i32
  }
  func.func @transform_3(%arg0: i32) -> (i32, i32, i32) {
    %c0_i32 = arith.constant 0 : i32
    %c0_i32_0 = arith.constant 0 : i32
    %c0_i32_1 = arith.constant 0 : i32
    %c0_i32_2 = arith.constant 0 : i32
    return %c0_i32, %c0_i32_0, %c0_i32_1 : i32, i32, i32
  }
  func.func @transform_4(%arg0: i32) -> (i32, i32, i32) {
    %c0_i32 = arith.constant 0 : i32
    %c0_i32_0 = arith.constant 0 : i32
    %c0_i32_1 = arith.constant 0 : i32
    %c0_i32_2 = arith.constant 0 : i32
    return %c0_i32, %c0_i32_0, %c0_i32_1 : i32, i32, i32
  }
  func.func @transform_5(%arg0: i32) -> (i32, i32) {
    %c0_i32 = arith.constant 0 : i32
    %c0_i32_0 = arith.constant 0 : i32
    %c0_i32_1 = arith.constant 0 : i32
    return %c0_i32, %c0_i32_0 : i32, i32
  }
  func.func @transform_6(%arg0: i32) -> (i32, i32) {
    %c0_i32 = arith.constant 0 : i32
    %c0_i32_0 = arith.constant 0 : i32
    %c0_i32_1 = arith.constant 0 : i32
    return %c0_i32, %c0_i32_0 : i32, i32
  }
  func.func @transform_7(%arg0: i32) -> (i32, i32) {
    %c0_i32 = arith.constant 0 : i32
    %c0_i32_0 = arith.constant 0 : i32
    return %arg0, %c0_i32 : i32, i32
  }
}

</mosaic_0001>

<bundles_post_ra>
// kernel: tpu_custom_call.1
= control target key start
LH: loop header
LB: loop body
LE: loop exit
PB: predicated region body
PF: predicated region fallthrough
CT: control target
= control target key end

     0   :  { %12 = vsyncpa [#allocation3], 0  ;;  %s799_s0 = inlined_call_operand.hbm [shape: bf16[16,128], index: 0, kind: input, shape index: {}]   ;;  %s800_s1 = inlined_call_operand.hbm [shape: bf16[128,128], index: 1, kind: input, shape index: {}]   ;;  %s801_s2 = inlined_call_operand.vmem [shape: bf16[1,128], index: 2, kind: input, shape index: {}]   ;;  %s802_s3 = inlined_call_operand.hbm [shape: bf16[1,128,128], index: 3, kind: input, shape index: {}]   ;;  %s803_s4 = inlined_call_operand.vmem [shape: bf16[1,1,128], index: 4, kind: input, shape index: {}]   ;;  %s804_s5 = inlined_call_operand.hbm [shape: bf16[128,128], index: 5, kind: input, shape index: {}]   ;;  %s805_s6 = inlined_call_operand.vmem [shape: f32[1,128], index: 6, kind: input, shape index: {}]   ;;  %s806_s7 = inlined_call_operand.hbm [shape: bf16[16,128], index: 7, kind: output, shape index: {}]  }
   0x1   :  { %13 = vsyncpa [#allocation6], 0 }
   0x2   :  { %14 = vsyncpa [#allocation9], 0 }
   0x3   :  { %15 = vsyncpa [#allocation4], 0  ;;  %s33_s26 = sshll.u32 %s800_s1, 4  ;;  %s713_s27 = smov [#allocation5]   ;;  %s34_s26 = int_to_ptr.hbm [resolvable:$true] %s33_s26 }
   0x4   :  { %s35_s28 = sshll.u32 %s713_s27, 4  ;;  %s20_s8 = sshll.u32 %s799_s0, 4  ;;  %s36_s28 = int_to_ptr.vmem [resolvable:$true] %s35_s28  ;;  %s21_s8 = int_to_ptr.hbm [resolvable:$true] %s20_s8 }
   0x5   :  { %s714_s9 = smov 64   ;;  %s715_s10 = smov 4  }
   0x6   :  { %41 = dma.hbm_to_vmem [thread:$0]  %s34_s26, 1024, %s36_s28, [#allocation6], %s714_s9, %s714_s9, %s715_s10  }
   0x7   :  { %s716_s11 = smov [#allocation2]   ;;  %s48_s1 = sshll.u32 %s802_s3, 4  ;;  %s49_s1 = int_to_ptr.hbm [resolvable:$true] %s48_s1 }
   0x8   :  { %s22_s12 = sshll.u32 %s716_s11, 4  ;;  %s63_s16 = sshll.u32 %s804_s5, 4  ;;  %s23_s12 = int_to_ptr.vmem [resolvable:$true] %s22_s12  ;;  %s64_s16 = int_to_ptr.hbm [resolvable:$true] %s63_s16 }
   0x9   :  { %28 = dma.hbm_to_vmem [thread:$0]  %s21_s8, 128, %s23_s12, [#allocation3], %s714_s9, %s714_s9, %s715_s10  }
   0xa   :  { %s717_s17 = smov [#allocation7]   ;;  %s718_s19 = smov [#allocation8]  }
   0xb   :  { %s50_s18 = sshll.u32 %s717_s17, 4  ;;  %s65_s3 = sshll.u32 %s718_s19, 4  ;;  %s51_s18 = int_to_ptr.vmem [resolvable:$true] %s50_s18  ;;  %s66_s3 = int_to_ptr.vmem [resolvable:$true] %s65_s3 }
   0xc   :  { %56 = dma.hbm_to_vmem [thread:$0]  %s49_s1, 1024, %s51_s18, [#allocation6], %s714_s9, %s714_s9, %s715_s10  }
   0xd   :  { %71 = dma.hbm_to_vmem [thread:$0]  %s64_s16, 1024, %s66_s3, [#allocation9], %s714_s9, %s714_s9, %s715_s10  }
   0xe   :  { %705 = dma.done.wait [#allocation3], 128  }
   0xf   :  { %706 = vsyncadd [#allocation3], 4294967168 }
  0x10   :  { %707 = dma.done.wait [#allocation6], 2048  }
  0x11   :  { %708 = vsyncadd [#allocation6], 4294965248 }
  0x12   :  { %709 = dma.done.wait [#allocation9], 1024  }
  0x13   :  { %710 = vsyncadd [#allocation9], 4294966272  ;;  %v547_v0 = vld [vmem:[#allocation5 + $0x38] sm:$0xff]  ;;  %v546_v1 = vld [vmem:[#allocation5 + $0x30] sm:$0xff]  ;;  %s422_s26 = sshll.u32 %s806_s7, 4  ;;  %s423_s26 = int_to_ptr.hbm [resolvable:$true] %s422_s26 }
  0x14   :  { %162 = vmatpush.bf16.msra.mxu0 %v547_v0  ;;  %v555_v2 = vld [vmem:[#allocation7 + $0x38] sm:$0xff]  ;;  %v554_v3 = vld [vmem:[#allocation7 + $0x30] sm:$0xff]  ;;  %v545_v4 = vld [vmem:[#allocation5 + $0x28] sm:$0xff] }
  0x15   :  { %259 = vmatpush.bf16.msra.mxu1 %v555_v2  ;;  %v553_v5 = vld [vmem:[#allocation7 + $0x28] sm:$0xff]  ;;  %v544_v6 = vld [vmem:[#allocation5 + $0x20] sm:$0xff]  ;;  %v543_v7 = vld [vmem:[#allocation5 + $0x18] sm:$0xff] }
  0x16   :  { %v542_v8 = vld [vmem:[#allocation5 + $0x10] sm:$0xff]  ;;  %v541_v9 = vld [vmem:[#allocation5 + $0x8] sm:$0xff]  ;;  %v540_v10 = vld [vmem:[#allocation5] sm:$0xff] }
  0x17   :  { %v539_v11 = vld [vmem:[#allocation2] sm:$0xff]  ;;  %v552_v12 = vld [vmem:[#allocation7 + $0x20] sm:$0xff]  ;;  %v550_v14 = vld [vmem:[#allocation7 + $0x10] sm:$0xff] }
  0x18   :  { %163 = vmatpush.bf16.msra.mxu0 %v546_v1  ;;  %v551_v13 = vld [vmem:[#allocation7 + $0x18] sm:$0xff]  ;;  %v549_v15 = vld [vmem:[#allocation7 + $0x8] sm:$0xff]  ;;  %v548_v16 = vld [vmem:[#allocation7] sm:$0xff] }
  0x19   :  { %260 = vmatpush.bf16.msra.mxu1 %v554_v3  ;;  %v563_v17 = vld [vmem:[#allocation8 + $0x38] sm:$0xff]  ;;  %v562_v18 = vld [vmem:[#allocation8 + $0x30] sm:$0xff]  ;;  %v561_v19 = vld [vmem:[#allocation8 + $0x28] sm:$0xff] }
  0x1a   :  { %360 = vmatpush.bf16.msra.mxu2 %v563_v17  ;;  %v178_v20 = vld [vmem:[%s801_s2] sm:$0x1]  ;;  %v560_v35 = vld [vmem:[#allocation8 + $0x20] sm:$0xff]  ;;  %v558_v37 = vld [vmem:[#allocation8 + $0x10] sm:$0xff] }
  0x1b   :  { %v180_v21 = vpack.i.b16 %v178_v20, %v178_v20  ;;  %v559_v36 = vld [vmem:[#allocation8 + $0x18] sm:$0xff]  ;;  %v557_v38 = vld [vmem:[#allocation8 + $0x8] sm:$0xff]  ;;  %v556_v39 = vld [vmem:[#allocation8] sm:$0xff] }
  0x1c   :  { %164 = vmatpush.bf16.msra.mxu0 %v545_v4  ;;  %v275_v40 = vld [vmem:[%s803_s4] sm:$0x1]  ;;  %s719_s4 = smov [#allocation10]  }
  0x1d   :  { %261 = vmatpush.bf16.msra.mxu1 %v553_v5  ;;  %v182_v24 = vperm.slane %v180_v21, 0  ;;  %v277_v41 = vpack.i.b16 %v275_v40, %v275_v40  ;;  %v576_v55 = vld [vmem:[%s805_s6] ss:$0 sm:$0xff]  ;;  %s420_s6 = sshll.u32 %s719_s4, 4  ;;  %s421_s6 = int_to_ptr.vmem [resolvable:$true] %s420_s6 }
  0x1e   :  { %361 = vmatpush.bf16.msra.mxu2 %v562_v18 }
  0x1f   :  { %v185_v26 = vunpack.c.l.bf16 %v182_v24  ;;  %v279_v44 = vperm.slane %v277_v41, 0 }
  0x20   :  { %165 = vmatpush.bf16.msra.mxu0 %v544_v6 }
  0x21   :  { %262 = vmatpush.bf16.msra.mxu1 %v552_v12  ;;  %v282_v46 = vunpack.c.l.bf16 %v279_v44 }
  0x22   :  { %362 = vmatpush.bf16.msra.mxu2 %v561_v19 }
  0x24   :  { %166 = vmatpush.bf16.msra.mxu0 %v543_v7 }
  0x25   :  { %263 = vmatpush.bf16.msra.mxu1 %v551_v13 }
  0x26   :  { %363 = vmatpush.bf16.msra.mxu2 %v560_v35 }
  0x28   :  { %167 = vmatpush.bf16.msra.mxu0 %v542_v8 }
  0x29   :  { %264 = vmatpush.bf16.msra.mxu1 %v550_v14 }
  0x2a   :  { %364 = vmatpush.bf16.msra.mxu2 %v559_v36 }
  0x2c   :  { %168 = vmatpush.bf16.msra.mxu0 %v541_v9 }
  0x2d   :  { %265 = vmatpush.bf16.msra.mxu1 %v549_v15 }
  0x2e   :  { %365 = vmatpush.bf16.msra.mxu2 %v558_v37 }
  0x30   :  { %169 = vmatpush.bf16.msra.mxu0 %v540_v10 }
  0x31   :  { %266 = vmatpush.bf16.msra.mxu1 %v548_v16 }
  0x32   :  { %366 = vmatpush.bf16.msra.mxu2 %v557_v38 }
  0x33   :  { %170 = vmatmul.bf16.vlgmr.msra.gmra.mxu0 %v539_v11 }
  0x36   :  { %367 = vmatpush.bf16.msra.mxu2 %v556_v39 }
  0xb0   :  { %v171_v22 = vpop.f32.mrf.mxu0 }
  0xb1   :  { %v176_v23 = vpack.c.bf16 %v171_v22, %v171_v22 }
  0xb3   :  { %v183_v25 = vunpack.c.l.bf16 %v176_v23 }
  0xb5   :  { %v186_v29 = vadd.f32 %v185_v26, %v183_v25 }
  0xb7   :  { %v192_v33 = vmax.f32 %v186_v29, 0.0 }
  0xb8   :  { %v173_v27 = vpop.f32.mrf.mxu0 }
  0xb9   :  { %v177_v28 = vpack.c.bf16 %v173_v27, %v173_v27 }
  0xbb   :  { %v184_v30 = vunpack.c.l.bf16 %v177_v28 }
  0xbd   :  { %v187_v31 = vadd.f32 %v185_v26, %v184_v30 }
  0xbf   :  { %v193_v32 = vmax.f32 %v187_v31, 0.0 }
  0xc1   :  { %v194_v34 = vpack.c.bf16 %v193_v32, %v192_v33 }
  0xc3   :  { %267 = vmatmul.bf16.vlgmr.msra.gmra.mxu1 %v194_v34 }
 0x140   :  { %v268_v42 = vpop.f32.mrf.mxu1 }
 0x141   :  { %v273_v43 = vpack.c.bf16 %v268_v42, %v268_v42 }
 0x143   :  { %v280_v45 = vunpack.c.l.bf16 %v273_v43 }
 0x145   :  { %v283_v49 = vadd.f32 %v282_v46, %v280_v45 }
 0x147   :  { %v289_v53 = vmax.f32 %v283_v49, 0.0 }
 0x148   :  { %v270_v47 = vpop.f32.mrf.mxu1 }
 0x149   :  { %v274_v48 = vpack.c.bf16 %v270_v47, %v270_v47 }
 0x14b   :  { %v281_v50 = vunpack.c.l.bf16 %v274_v48 }
 0x14d   :  { %v284_v51 = vadd.f32 %v282_v46, %v281_v50 }
 0x14f   :  { %v290_v52 = vmax.f32 %v284_v51, 0.0 }
 0x151   :  { %v291_v54 = vpack.c.bf16 %v290_v52, %v289_v53 }
 0x153   :  { %368 = vmatmul.bf16.vlgmr.msra.gmra.mxu2 %v291_v54 }
 0x1d6   :  { %v369_v56 = vpop.f32.mrf.mxu2 }
 0x1d7   :  { %v370_v57 = vadd.f32 %v576_v55, %v369_v56 }
 0x1d9   :  { %v537_v58 = vmul.f32 -1.442695, %v370_v57 }
 0x1db   :  { %577 = vpow2.f32 %v537_v58 }
 0x1de   :  { %v371_v59 = vpop.f32.mrf.mxu2 }
 0x1df   :  { %v372_v60 = vadd.f32 %v576_v55, %v371_v59 }
 0x1e1   :  { %v578_v61 = vpop.eup %577  ;;  %v538_v62 = vmul.f32 -1.442695, %v372_v60 }
 0x1e2   :  { %v380_v63 = vadd.f32 1.0, %v578_v61 }
 0x1e3   :  { %579 = vpow2.f32 %v538_v62 }
 0x1e4   :  { %581 = vrcp.f32 %v380_v63  ;;  %vm387_vm1 = vweird.f32 %v380_v63  ;;  %v393_v10 = vand.u32 2147483648, %v380_v63  ;;  %v391_v12 = vand.u32 2147483647, %v380_v63 }
 0x1e6   :  { %v394_v17 = vor.u32 1.1754944e-38, %v393_v10  ;;  %vm392_vm6 = vcmp.eq.f32.partialorder %v391_v12, 8.507059e+37 }
 0x1e9   :  { %v580_v0 = vpop.eup %579 }
 0x1ea   :  { %v582_v1 = vpop.eup %581  ;;  %v381_v2 = vadd.f32 1.0, %v580_v0 }
 0x1eb   :  { %v383_v3 = vmul.f32 %v582_v1, %v380_v63  ;;  %vm388_vm0 = vweird.f32 %v582_v1 }
 0x1ec   :  { %583 = vrcp.f32 %v381_v2  ;;  %v408_v11 = vand.u32 2147483648, %v381_v2  ;;  %v406_v14 = vand.u32 2147483647, %v381_v2  ;;  %vm389_vm3 = vmor %vm387_vm1, %vm388_vm0  ;;  %vm402_vm4 = vweird.f32 %v381_v2 }
 0x1ed   :  { %v384_v4 = vsub.f32 1.0, %v383_v3 }
 0x1ee   :  { %v409_v18 = vor.u32 1.1754944e-38, %v408_v11  ;;  %vm407_vm7 = vcmp.eq.f32.partialorder %v406_v14, 8.507059e+37 }
 0x1ef   :  { %v385_v5 = vmul.f32 %v582_v1, %v384_v4 }
 0x1f1   :  { %v386_v9 = vadd.f32 %v582_v1, %v385_v5 }
 0x1f2   :  { %v584_v6 = vpop.eup %583 }
 0x1f3   :  { %v398_v7 = vmul.f32 %v584_v6, %v381_v2  ;;  %vm403_vm2 = vweird.f32 %v584_v6  ;;  %v390_v15 = vsel %vm389_vm3, %v582_v1, %v386_v9 }
 0x1f4   :  { %vm404_vm5 = vmor %vm402_vm4, %vm403_vm2  ;;  %v395_v20 = vsel %vm392_vm6, %v394_v17, %v390_v15 }
 0x1f5   :  { %v399_v8 = vsub.f32 1.0, %v398_v7 }
 0x1f7   :  { %v400_v13 = vmul.f32 %v584_v6, %v399_v8 }
 0x1f9   :  { %v401_v16 = vadd.f32 %v584_v6, %v400_v13 }
 0x1fb   :  { %v405_v19 = vsel %vm404_vm5, %v584_v6, %v401_v16 }
 0x1fc   :  { %v410_v21 = vsel %vm407_vm7, %v409_v18, %v405_v19 }
 0x1fd   :  { %v567_v22 = vpack.c.bf16 %v410_v21, %v395_v20 }
 0x1ff   :  { %568 = vst [vmem:[#allocation10] sm:$0xff] %v567_v22  }
 0x200   :  { %428 = dma.vmem_to_hbm [thread:$0]  %s421_s6, 128, %s423_s26, [#allocation4], %s714_s9, %s714_s9, %s715_s10  }
 0x201   :  { %711 = dma.done.wait [#allocation4], 128  }
 0x202   :  { %712 = vsyncadd [#allocation4], 4294967168 }
 0x203   :  { %433 = vsyncpa [#allocation3], 1 }
 0x204   :  { %434 = vsyncpa [#allocation6], 1 }
 0x205   :  { %435 = vsyncpa [#allocation9], 1 }
 0x206   :  { %436 = vsyncpa [#allocation4], 1 }

</bundles_post_ra>
